<compile_context>
chip_gen: v6e
topology: v6e:2x2x1
jax: 0.10.0
libtpu: 0.0.40
codegen_flags: <defaults>
</compile_context>

<pallas_src>
import math

import jax
import jax.numpy as jnp
from jax.experimental import pallas as pl
from jax.experimental.pallas import tpu as pltpu


def condnet_kernel(x_ref, w_in_ref, b_in_ref, w_mid_ref, b_mid_ref,
                   w_out_ref, b_out_ref, o_ref):
    # ---- inLayer (dense, bf16 in / f32 acc) + bias + ReLU (f32) ----
    h = jnp.dot(x_ref[...], w_in_ref[...], preferred_element_type=jnp.float32)
    h = jnp.maximum(h + b_in_ref[...], 0.0)

    # ---- condensed mid layers, folded to dense (num_mid x num_mid) matmuls ----
    num_cond = w_mid_ref.shape[0]
    for i in range(num_cond):                       # static unrolled, num_cond is small
        h = jnp.dot(h.astype(jnp.bfloat16), w_mid_ref[i],
                    preferred_element_type=jnp.float32)
        h = jnp.maximum(h + b_mid_ref[i], 0.0)

    # ---- outLayer (dense, lane-dense padded output) ----
    out = jnp.dot(h.astype(jnp.bfloat16), w_out_ref[...],
                  preferred_element_type=jnp.float32)
    o_ref[...] = out + b_out_ref[...]


def condnet_forward(x_bf16, w_in_t, b_in, w_eff, b_mid, w_out_t, b_out, *, tb=128):
    """x_bf16: (B, num_in) bf16; weights bf16, biases f32 (already padded / transposed)."""
    B, num_in = x_bf16.shape
    num_out_pad = w_out_t.shape[1]
    assert B % tb == 0, "batch must be a multiple of the batch tile"

    def resident(shape):
        nd = len(shape)
        return pl.BlockSpec(shape, lambda b, _nd=nd: (0,) * _nd)

    out_padded = pl.pallas_call(
        condnet_kernel,
        out_shape=jax.ShapeDtypeStruct((B, num_out_pad), jnp.float32),
        grid_spec=pl.GridSpec(
            grid=(B // tb,),
            in_specs=[
                pl.BlockSpec((tb, num_in), lambda b: (b, 0)),   # x streams
                resident(w_in_t.shape), resident(b_in.shape),    # weights resident
                resident(w_eff.shape), resident(b_mid.shape),
                resident(w_out_t.shape), resident(b_out.shape),
            ],
            out_specs=pl.BlockSpec((tb, num_out_pad), lambda b: (b, 0)),
        ),
        compiler_params=pltpu.CompilerParams(dimension_semantics=("parallel",)),
    )(x_bf16, w_in_t, b_in, w_eff, b_mid, w_out_t, b_out)
    return out_padded


if __name__ == "__main__":
    # CondNet(num_layers=4, ...) hyperparameters (add_bias=True, make_linear=False).
    B = 256          # batch (multiple of the 128-row batch tile -> fills MXU rows)
    TB = 128         # batch tile
    num_in = 32
    num_mid = 128
    num_out = 16
    num_out_pad = 128   # lane-dense padded output width
    fan_in = 8
    num_layers = 4
    num_cond = num_layers - 2   # 2 condensed mid layers

    key = jax.random.PRNGKey(0)
    k = jax.random.split(key, 8)

    # Deterministic init mirroring CondNet.reinit_parameters:
    #   normal(0, 1/sqrt(weight.shape[-1])) for weights and biases.
    w_in = jax.random.normal(k[0], (num_mid, num_in), jnp.float32) / math.sqrt(num_in)
    b_in_v = jax.random.normal(k[1], (num_mid,), jnp.float32) / math.sqrt(num_in)
    w_mid = jax.random.normal(k[2], (num_cond, num_mid, fan_in), jnp.float32) / math.sqrt(fan_in)
    b_mid_v = jax.random.normal(k[3], (num_cond, num_mid), jnp.float32) / math.sqrt(fan_in)
    w_out = jax.random.normal(k[4], (num_out, num_mid), jnp.float32) / math.sqrt(num_mid)
    b_out_v = jax.random.normal(k[5], (num_out,), jnp.float32) / math.sqrt(num_mid)

    # TODO(synk): gen_indx_seqs (fan_out_const balancing) was not provided; use
    # deterministic uniform random index sequences of the same shape/range instead.
    idx = jax.random.randint(k[6], (num_cond, num_mid, fan_in), 0, num_mid)

    x = jax.random.normal(k[7], (B, num_in), jnp.float32)

    # --- glue: fold the condensed gather into effective dense weights ---
    # W_eff[i, m, o] = sum_j W_mid[i, o, j] * (idx[i, o, j] == m)   (exact)
    onehot = jax.nn.one_hot(idx, num_mid, dtype=jnp.float32)          # (nc, nm, fi, nm)
    w_eff_f32 = jnp.einsum("ioj,iojm->imo", w_mid, onehot)            # (nc, nm, nm)

    # --- glue: transpose / pad / cast for the kernel ---
    w_in_t = jnp.transpose(w_in).astype(jnp.bfloat16)                 # (num_in, num_mid)
    b_in = b_in_v.reshape(1, num_mid)                                 # f32
    w_eff = w_eff_f32.astype(jnp.bfloat16)                            # (nc, nm, nm)
    b_mid = b_mid_v.reshape(num_cond, 1, num_mid)                     # f32
    w_out_t = jnp.zeros((num_mid, num_out_pad), jnp.float32)
    w_out_t = w_out_t.at[:, :num_out].set(jnp.transpose(w_out)).astype(jnp.bfloat16)
    b_out = jnp.zeros((1, num_out_pad), jnp.float32).at[0, :num_out].set(b_out_v)
    x_bf16 = x.astype(jnp.bfloat16)

    out_padded = condnet_forward(x_bf16, w_in_t, b_in, w_eff, b_mid, w_out_t, b_out, tb=TB)
    out_padded = jax.block_until_ready(out_padded)
    out = out_padded[:, :num_out]
    assert out.shape == (B, num_out)

    # --- check 1: mirror of the kernel's bf16-weight / f32-accumulate math (tight) ---
    def ref_mirror(xv):
        h = jnp.dot(xv.astype(jnp.bfloat16), w_in_t, preferred_element_type=jnp.float32)
        h = jnp.maximum(h + b_in_v, 0.0)
        for i in range(num_cond):
            h = jnp.dot(h.astype(jnp.bfloat16), w_eff[i], preferred_element_type=jnp.float32)
            h = jnp.maximum(h + b_mid_v[i], 0.0)
        o = jnp.dot(h.astype(jnp.bfloat16), w_out_t, preferred_element_type=jnp.float32)
        return (o + b_out)[:, :num_out]

    ref_m = jax.block_until_ready(ref_mirror(x))
    assert jnp.allclose(out, ref_m, rtol=2e-3, atol=2e-3), "mismatch vs bf16 mirror reference"

    # --- check 2: full-precision reference of the original PyTorch math (loose, bf16 rounding) ---
    def ref_f32(xv):
        h = jnp.maximum(xv @ w_in.T + b_in_v, 0.0)
        for i in range(num_cond):
            gathered = h[:, idx[i]]                                   # (B, num_mid, fan_in)
            h = jnp.maximum(jnp.sum(w_mid[i] * gathered, axis=2) + b_mid_v[i], 0.0)
        return h @ w_out.T + b_out_v

    ref = jax.block_until_ready(ref_f32(x))
    assert jnp.allclose(out, ref, rtol=5e-2, atol=5e-2), "mismatch vs f32 reference"

    print("KERNEL_OK")
</pallas_src>

<mosaic_0001>
module attributes {stable_mosaic.version = 11 : i64} {
  func.func @condnet_kernel(%arg0: i32, %arg1: memref<128x32xbf16, #tpu.memory_space<vmem>>, %arg2: memref<32x128xbf16, #tpu.memory_space<vmem>>, %arg3: memref<1x128xf32, #tpu.memory_space<vmem>>, %arg4: memref<2x128x128xbf16, #tpu.memory_space<vmem>>, %arg5: memref<2x1x128xf32, #tpu.memory_space<vmem>>, %arg6: memref<128x128xbf16, #tpu.memory_space<vmem>>, %arg7: memref<1x128xf32, #tpu.memory_space<vmem>>, %arg8: memref<128x128xf32, #tpu.memory_space<vmem>>) attributes {dimension_semantics = [#tpu.dimension_semantics<parallel>], iteration_bounds = array<i64: 2>, scalar_prefetch = 0 : i64, scratch_operands = 0 : i64, tpu.core_type = #tpu.core_type<tc>, window_params = [{transform_indices = @transform_0, window_bounds = array<i64: 128, 32>}, {pipeline_mode = #tpu.pipeline_mode<synchronous>, transform_indices = @transform_1, window_bounds = array<i64: 32, 128>}, {pipeline_mode = #tpu.pipeline_mode<synchronous>, transform_indices = @transform_2, window_bounds = array<i64: 1, 128>}, {pipeline_mode = #tpu.pipeline_mode<synchronous>, transform_indices = @transform_3, window_bounds = array<i64: 2, 128, 128>}, {pipeline_mode = #tpu.pipeline_mode<synchronous>, transform_indices = @transform_4, window_bounds = array<i64: 2, 1, 128>}, {pipeline_mode = #tpu.pipeline_mode<synchronous>, transform_indices = @transform_5, window_bounds = array<i64: 128, 128>}, {pipeline_mode = #tpu.pipeline_mode<synchronous>, transform_indices = @transform_6, window_bounds = array<i64: 1, 128>}, {transform_indices = @transform_7, window_bounds = array<i64: 128, 128>}]} {
    %c0 = arith.constant 0 : index
    %c0_0 = arith.constant 0 : index
    %0 = vector.load %arg1[%c0, %c0_0] : memref<128x32xbf16, #tpu.memory_space<vmem>>, vector<128x32xbf16>
    %c0_1 = arith.constant 0 : index
    %c0_2 = arith.constant 0 : index
    %1 = vector.load %arg2[%c0_1, %c0_2] : memref<32x128xbf16, #tpu.memory_space<vmem>>, vector<32x128xbf16>
    %cst = arith.constant dense<0.000000e+00> : vector<128x128xf32>
    %2 = tpu.matmul %0, %1, %cst {dimension_numbers = #tpu.dot_dimension_numbers<[1], [0], [0], [1], [0, 0, 1, 1], [], []>} : vector<128x32xbf16>, vector<32x128xbf16>, vector<128x128xf32> -> vector<128x128xf32>
    %c0_3 = arith.constant 0 : index
    %c0_4 = arith.constant 0 : index
    %3 = vector.load %arg3[%c0_3, %c0_4] : memref<1x128xf32, #tpu.memory_space<vmem>>, vector<1x128xf32>
    %4 = vector.broadcast %3 : vector<1x128xf32> to vector<128x128xf32>
    %5 = arith.addf %2, %4 : vector<128x128xf32>
    %cst_5 = arith.constant 0.000000e+00 : f32
    %6 = vector.broadcast %cst_5 : f32 to vector<128x128xf32>
    %7 = arith.maximumf %5, %6 : vector<128x128xf32>
    %8 = arith.truncf %7 : vector<128x128xf32> to vector<128x128xbf16>
    %c0_6 = arith.constant 0 : index
    %c0_7 = arith.constant 0 : index
    %c0_8 = arith.constant 0 : index
    %9 = vector.load %arg4[%c0_6, %c0_7, %c0_8] : memref<2x128x128xbf16, #tpu.memory_space<vmem>>, vector<1x128x128xbf16>
    %10 = vector.shape_cast %9 : vector<1x128x128xbf16> to vector<128x128xbf16>
    %cst_9 = arith.constant dense<0.000000e+00> : vector<128x128xf32>
    %11 = tpu.matmul %8, %10, %cst_9 {dimension_numbers = #tpu.dot_dimension_numbers<[1], [0], [0], [1], [0, 0, 1, 1], [], []>} : vector<128x128xbf16>, vector<128x128xbf16>, vector<128x128xf32> -> vector<128x128xf32>
    %c0_10 = arith.constant 0 : index
    %c0_11 = arith.constant 0 : index
    %c0_12 = arith.constant 0 : index
    %12 = vector.load %arg5[%c0_10, %c0_11, %c0_12] : memref<2x1x128xf32, #tpu.memory_space<vmem>>, vector<1x1x128xf32>
    %13 = vector.shape_cast %12 : vector<1x1x128xf32> to vector<1x128xf32>
    %14 = vector.broadcast %13 : vector<1x128xf32> to vector<128x128xf32>
    %15 = arith.addf %11, %14 : vector<128x128xf32>
    %cst_13 = arith.constant 0.000000e+00 : f32
    %16 = vector.broadcast %cst_13 : f32 to vector<128x128xf32>
    %17 = arith.maximumf %15, %16 : vector<128x128xf32>
    %18 = arith.truncf %17 : vector<128x128xf32> to vector<128x128xbf16>
    %c1 = arith.constant 1 : index
    %c0_14 = arith.constant 0 : index
    %c0_15 = arith.constant 0 : index
    %19 = vector.load %arg4[%c1, %c0_14, %c0_15] : memref<2x128x128xbf16, #tpu.memory_space<vmem>>, vector<1x128x128xbf16>
    %20 = vector.shape_cast %19 : vector<1x128x128xbf16> to vector<128x128xbf16>
    %cst_16 = arith.constant dense<0.000000e+00> : vector<128x128xf32>
    %21 = tpu.matmul %18, %20, %cst_16 {dimension_numbers = #tpu.dot_dimension_numbers<[1], [0], [0], [1], [0, 0, 1, 1], [], []>} : vector<128x128xbf16>, vector<128x128xbf16>, vector<128x128xf32> -> vector<128x128xf32>
    %c1_17 = arith.constant 1 : index
    %c0_18 = arith.constant 0 : index
    %c0_19 = arith.constant 0 : index
    %22 = vector.load %arg5[%c1_17, %c0_18, %c0_19] : memref<2x1x128xf32, #tpu.memory_space<vmem>>, vector<1x1x128xf32>
    %23 = vector.shape_cast %22 : vector<1x1x128xf32> to vector<1x128xf32>
    %24 = vector.broadcast %23 : vector<1x128xf32> to vector<128x128xf32>
    %25 = arith.addf %21, %24 : vector<128x128xf32>
    %cst_20 = arith.constant 0.000000e+00 : f32
    %26 = vector.broadcast %cst_20 : f32 to vector<128x128xf32>
    %27 = arith.maximumf %25, %26 : vector<128x128xf32>
    %28 = arith.truncf %27 : vector<128x128xf32> to vector<128x128xbf16>
    %c0_21 = arith.constant 0 : index
    %c0_22 = arith.constant 0 : index
    %29 = vector.load %arg6[%c0_21, %c0_22] : memref<128x128xbf16, #tpu.memory_space<vmem>>, vector<128x128xbf16>
    %cst_23 = arith.constant dense<0.000000e+00> : vector<128x128xf32>
    %30 = tpu.matmul %28, %29, %cst_23 {dimension_numbers = #tpu.dot_dimension_numbers<[1], [0], [0], [1], [0, 0, 1, 1], [], []>} : vector<128x128xbf16>, vector<128x128xbf16>, vector<128x128xf32> -> vector<128x128xf32>
    %c0_24 = arith.constant 0 : index
    %c0_25 = arith.constant 0 : index
    %31 = vector.load %arg7[%c0_24, %c0_25] : memref<1x128xf32, #tpu.memory_space<vmem>>, vector<1x128xf32>
    %32 = vector.broadcast %31 : vector<1x128xf32> to vector<128x128xf32>
    %33 = arith.addf %30, %32 : vector<128x128xf32>
    %c0_26 = arith.constant 0 : index
    %c0_27 = arith.constant 0 : index
    %34 = vector.load %arg8[%c0_26, %c0_27] : memref<128x128xf32, #tpu.memory_space<vmem>>, vector<128x128xf32>
    tpu.vector_store %arg8[%c0_26, %c0_27], %33 {strides = array<i32>} : memref<128x128xf32, #tpu.memory_space<vmem>>, vector<128x128xf32>,
    return
  }
  func.func @transform_0(%arg0: i32) -> (i32, i32) {
    %c0_i32 = arith.constant 0 : i32
    %c0_i32_0 = arith.constant 0 : i32
    return %arg0, %c0_i32 : i32, i32
  }
  func.func @transform_1(%arg0: i32) -> (i32, i32) {
    %c0_i32 = arith.constant 0 : i32
    %c0_i32_0 = arith.constant 0 : i32
    %c0_i32_1 = arith.constant 0 : i32
    return %c0_i32, %c0_i32_0 : i32, i32
  }
  func.func @transform_2(%arg0: i32) -> (i32, i32) {
    %c0_i32 = arith.constant 0 : i32
    %c0_i32_0 = arith.constant 0 : i32
    %c0_i32_1 = arith.constant 0 : i32
    return %c0_i32, %c0_i32_0 : i32, i32
  }
  func.func @transform_3(%arg0: i32) -> (i32, i32, i32) {
    %c0_i32 = arith.constant 0 : i32
    %c0_i32_0 = arith.constant 0 : i32
    %c0_i32_1 = arith.constant 0 : i32
    %c0_i32_2 = arith.constant 0 : i32
    return %c0_i32, %c0_i32_0, %c0_i32_1 : i32, i32, i32
  }
  func.func @transform_4(%arg0: i32) -> (i32, i32, i32) {
    %c0_i32 = arith.constant 0 : i32
    %c0_i32_0 = arith.constant 0 : i32
    %c0_i32_1 = arith.constant 0 : i32
    %c0_i32_2 = arith.constant 0 : i32
    return %c0_i32, %c0_i32_0, %c0_i32_1 : i32, i32, i32
  }
  func.func @transform_5(%arg0: i32) -> (i32, i32) {
    %c0_i32 = arith.constant 0 : i32
    %c0_i32_0 = arith.constant 0 : i32
    %c0_i32_1 = arith.constant 0 : i32
    return %c0_i32, %c0_i32_0 : i32, i32
  }
  func.func @transform_6(%arg0: i32) -> (i32, i32) {
    %c0_i32 = arith.constant 0 : i32
    %c0_i32_0 = arith.constant 0 : i32
    %c0_i32_1 = arith.constant 0 : i32
    return %c0_i32, %c0_i32_0 : i32, i32
  }
  func.func @transform_7(%arg0: i32) -> (i32, i32) {
    %c0_i32 = arith.constant 0 : i32
    %c0_i32_0 = arith.constant 0 : i32
    return %arg0, %c0_i32 : i32, i32
  }
}

</mosaic_0001>

<bundles_post_ra>
// kernel: tpu_custom_call.1
= control target key start
LH: loop header
LB: loop body
LE: loop exit
PB: predicated region body
PF: predicated region fallthrough
CT: control target
= control target key end

     0   :  { %12 = vsyncpa [#allocation3], 0  ;;  %s1905_s0 = inlined_call_operand.vmem [shape: bf16[256,32], index: 0, kind: input, shape index: {}]   ;;  %s1906_s1 = inlined_call_operand.vmem [shape: bf16[32,128], index: 1, kind: input, shape index: {}]   ;;  %s1907_s2 = inlined_call_operand.vmem [shape: f32[1,128], index: 2, kind: input, shape index: {}]   ;;  %s1908_s3 = inlined_call_operand.vmem [shape: bf16[2,128,128], index: 3, kind: input, shape index: {}]   ;;  %s1909_s4 = inlined_call_operand.vmem [shape: f32[2,1,128], index: 4, kind: input, shape index: {}]   ;;  %s1910_s5 = inlined_call_operand.hbm [shape: bf16[128,128], index: 5, kind: input, shape index: {}]   ;;  %s1911_s6 = inlined_call_operand.vmem [shape: f32[1,128], index: 6, kind: input, shape index: {}]   ;;  %s1912_s7 = inlined_call_operand.hbm [shape: f32[256,128], index: 7, kind: output, shape index: {}]  }
   0x1   :  { %13 = vsyncpa [#allocation4], 0 }
   0x2   :  { %15 = vsyncpa [#allocation4 + $0x1], 0  ;;  %s1673_s24 = smov 0   ;;  %s1675_s25 = smov 0  }
   0x3   :  { %s1677_s26 = smov 0   ;;  %s1679_s27 = smov 0  }
   0x4 LB: > { %s1694_s28 = sadd.s32 4294967295, %s1625_s27   ;;  %s1179_s29 = sadd.s32 4294967294, %s1625_s27   ;;  %s1625_s27 = sphi %s1679_s27, %s1920_s27   ;;  %s1621_s26 = sphi %s1677_s26, %s1919_s26   ;;  %s1617_s25 = sphi %s1675_s25, %s1918_s25   ;;  %s1613_s24 = sphi %s1673_s24, %s1917_s24  }
   0x5   : > { %s1698_s30 = sadd.s32 1, %s1625_s27   ;;  %s180_s8 = sadd.s32 1, %s1621_s26 }
   0x6   : > { %s177_s9 = ssub.s32 %s1625_s27, %s1698_s30  ;;  %p190_p0 = scmp.ne.s32.totalorder %s1621_s26, %s1617_s25 }
   0x7   : > { %p178_p1 = scmp.eq.s32.totalorder %s177_s9, 0  ;;  %p191_p2 = scmp.eq.s32.totalorder %s1694_s28, 1 }
   0x8   : > { %p196_p3 = scmp.ne.s32.totalorder %s1617_s25, %s1613_s24  ;;  %p197_p4 = scmp.eq.s32.totalorder %s1179_s29, 1 }
   0x9   : > { %s1709_s10 = scalar_select %p178_p1, %s1621_s26, %s180_s8  }
   0xa   : > { %p1711_p5 = por %p191_p2, %p190_p0  ;;  %p1715_p6 = por %p197_p4, %p196_p3 }
   0xb   : > { %p1180_p7 = scmp.ge.s32.totalorder %s1625_s27, 1  ;;  %p204_p8 = scmp.lt.s32.totalorder %s1625_s27, 3 }
   0xc   : > { %s1914_s12 = scalar_select %p1715_p6, 1, 0 }
   0xd   : > { %p1461_p9 = scmp.eq.s32.totalorder %s1694_s28, 0  ;;  %p1722_p10 = pnand %p1180_p7, %p204_p8 }
   0xe   : > { %s1627_s14 = smov [#allocation2]  }
   0xf   : > { %s228_s15 = sshll.u32 %s1627_s14, 4  ;;  %p1453_p11 = pneg %p1722_p10  ;;  %s229_s15 = int_to_ptr.vmem [resolvable:$true] %s228_s15 }
  0x10   : > { %s1546_s16 = scalar_lea.vmem %s229_s15, 1024  ;;  %p1554_p3 = scmp.lt.s32.totalorder %s229_s15, %s229_s15 }
  0x11   : > { %p1454_p12 = pnand %p1461_p9, %p1453_p11  ;;  %p1547_p0 = scmp.ne.s32.totalorder %s229_s15, %s1546_s16 }
  0x12   : > { %p1555_p4 = scmp.lt.s32.totalorder %s1546_s16, %s1546_s16 }
  0x13   : > { %p1537_p13 = pneg %p1454_p12 }
  0x14   : > { %p1556_p6 = por %p1555_p4, %p1554_p3 }
  0x15   : > { %p1549_p1 = pnand %p1547_p0, %p1537_p13 }
  0x17   : > { %p1550_p2 = pneg %p1549_p1 }
  0x19   : > { %p1557_p7 = pnand %p1556_p6, %p1550_p2 }
  0x1b   : > { %1560 = shalt.err (!%p1557_p7)
}
  0x1c   : > { %s1628_s17 = smov 64   ;;  %s1629_s18 = smov 4  }
  0x1d   : > { %1456 = dma.hbm_to_vmem [thread:$0]  (!%p1454_p12), %s1910_s5, 1024, %s229_s15, [#allocation3], %s1628_s17, %s1628_s17, %s1629_s18  }
  0x1e   : > { %256 = sbr.rel (%p1722_p10) target bundleno = 902 (0x386), region = 48 }
  0x23   : > { %1604 = dma.done.wait (%p1461_p9), [#allocation3], 1024  }
  0x24   : > { %1606 = vsyncadd (%p1461_p9), [#allocation3], 4294966272  ;;  %s1186_s21 = sshll.u32 %s1694_s28, 4  ;;  %v1501_v0 = vld [vmem:[%s1906_s1 + $0x8] sm:$0xff]   ;;  %v1502_v1 = vld [vmem:[%s1906_s1] sm:$0xff]   ;;  %vm375_vm0 = vcmask 261120  }
  0x25   : > { %p289_p8 = scmp.lt.s32.totalorder %s1186_s21, 31  ;;  %1315 = vmatprep.subr.bf16.mxu0 %v1501_v0  ;;  %v1511_v5 = vld [vmem:[%s1908_s3 + $0x38] sm:$0xff]   ;;  %v1512_v6 = vld [vmem:[%s1908_s3 + $0x30] sm:$0xff]   ;;  %v1513_v9 = vld [vmem:[%s1908_s3 + $0x28] sm:$0xff]   ;;  %s285_s14 = sand.u32 1, %s1617_s25  }
  0x26   : > { %1316 = vmatpush3.bf16.msra.mxu0 %v1501_v0  ;;  %1335 = vmatprep.subr.bf16.mxu1 %v1511_v5  ;;  %v1514_v10 = vld [vmem:[%s1908_s3 + $0x20] sm:$0xff]   ;;  %v1515_v12 = vld [vmem:[%s1908_s3 + $0x18] sm:$0xff]   ;;  %v1516_v15 = vld [vmem:[%s1908_s3 + $0x10] sm:$0xff]   ;;  %s1185_s13 = sshll.u32 %s285_s14, 7  ;;  %s1256_s18 = sshll.u32 %s1694_s28, 11 }
  0x27   : > { %s1922_s21 = smov (!%p289_p8, %s1186_s21), 31  ;;  %1317 = vmatprep.subr.bf16.mxu0 %v1502_v1  ;;  %1336 = vmatpush3.bf16.msra.mxu1 %v1511_v5  ;;  %v1517_v16 = vld [vmem:[%s1908_s3 + $0x8] sm:$0xff]   ;;  %v1518_v17 = vld [vmem:[%s1908_s3] sm:$0xff]   ;;  %v1519_v18 = vld [vmem:[%s1908_s3 + $0x78] sm:$0xff]   ;;  %s1836_s17 = scalar_lea.vmem [#allocation5], %s1185_s13 }
  0x28   : > { %s1187_s22 = sshll.u32 %s1922_s21, 2  ;;  %1337 = vmatprep.subr.bf16.mxu1 %v1512_v6  ;;  %v1520_v19 = vld [vmem:[%s1908_s3 + $0x70] sm:$0xff]   ;;  %v1521_v20 = vld [vmem:[%s1908_s3 + $0x68] sm:$0xff]   ;;  %v1522_v21 = vld [vmem:[%s1908_s3 + $0x60] sm:$0xff]   ;;  %s1857_s21 = scalar_lea.hbm %s1912_s7, %s1256_s18 }
  0x29   : > { %s1743_s8 = scalar_lea.vmem %s1905_s0, %s1187_s22  ;;  %v1523_v22 = vld [vmem:[%s1908_s3 + $0x58] sm:$0xff]   ;;  %v1188_v25 = vld [vmem:[%s1907_s2] ss:$0 sm:$0xff]  ;;  %s1865_s28 = scalar_lea.sflag [#allocation4], %s285_s14 }
  0x2a   : > { %v1503_v2 = vld [vmem:[%s1743_s8] sm:$0xff]   ;;  %v1504_v3 = vld [vmem:[%s1743_s8 + $0x8] sm:$0xff]   ;;  %1318 = vmatpush3.bf16.msra.mxu0 %v1502_v1  ;;  %v1505_v4 = vld [vmem:[%s1743_s8 + $0x10] sm:$0xff]   ;;  %s1630_s23 = smov [#allocation5]  }
  0x2b   : > { %1319 = vmatprep.mubr.msk.bf16.mxu0 %vm375_vm0, %v1503_v2  ;;  %v1506_v7 = vld [vmem:[%s1743_s8 + $0x18] sm:$0xff]   ;;  %v1507_v8 = vld [vmem:[%s1743_s8 + $0x20] sm:$0xff]   ;;  %1338 = vmatpush3.bf16.msra.mxu1 %v1512_v6  ;;  %v1508_v11 = vld [vmem:[%s1743_s8 + $0x28] sm:$0xff]   ;;  %s1565_s29 = sshll.u32 %s1630_s23, 4  ;;  %s1566_s29 = int_to_ptr.vmem [resolvable:$false] %s1565_s29 }
  0x2c   : > { %1339 = vmatprep.subr.bf16.mxu1 %v1513_v9  ;;  %v1509_v13 = vld [vmem:[%s1743_s8 + $0x30] sm:$0xff]   ;;  %v1510_v14 = vld [vmem:[%s1743_s8 + $0x38] sm:$0xff]   ;;  %1367 = vmatprep.subr.bf16.mxu0 %v1519_v18  ;;  %s1105_s8 = sshll.u32 %s1836_s17, 4  ;;  %s1567_s9 = scalar_lea.vmem %s1566_s29, 4096  ;;  %s1859_s8 = int_to_ptr.vmem [resolvable:$true] %s1105_s8 }
  0x2d   : > { %1320 = vmatmul.mubr.msk.bf16.vlgmr.msra.gmra.mxu0 %vm375_vm0, %v1504_v3  ;;  %s1561_s22 = scalar_lea.vmem %s1859_s8, 2048  ;;  %p1568_p11 = scmp.lt.s32.totalorder %s1859_s8, %s1566_s29 }
  0x2e   : > { %1323 = vmatprep.mubr.msk.bf16.mxu0 %vm375_vm0, %v1505_v4  ;;  %1368 = vmatpush3.bf16.msra.mxu0 %v1519_v18  ;;  %v1526_v18 = vld [vmem:[%s1908_s3 + $0x40] sm:$0xff]   ;;  %p1562_p6 = scmp.ne.s32.totalorder %s1859_s8, %s1561_s22  ;;  %p1569_p12 = scmp.lt.s32.totalorder %s1567_s9, %s1561_s22 }
  0x2f   : > { %1340 = vmatpush3.bf16.msra.mxu1 %v1513_v9  ;;  %1369 = vmatprep.subr.bf16.mxu0 %v1520_v19 }
  0x30   : > { %1341 = vmatprep.subr.bf16.mxu1 %v1514_v10  ;;  %p1563_p9 = pnand %p1562_p6, %p1711_p5  ;;  %p1570_p13 = por %p1569_p12, %p1568_p11 }
  0x32   : > { %1370 = vmatpush3.bf16.msra.mxu0 %v1520_v19  ;;  %v1527_v19 = vld [vmem:[#allocation2 + $0x38] sm:$0xff]   ;;  %p1564_p10 = pneg %p1563_p9 }
  0x33   : > { %1342 = vmatpush3.bf16.msra.mxu1 %v1514_v10  ;;  %1371 = vmatprep.subr.bf16.mxu0 %v1521_v20 }
  0x34   : > { %1343 = vmatprep.subr.bf16.mxu1 %v1515_v12  ;;  %p1571_p0 = pnand %p1570_p13, %p1564_p10 }
  0x35   : > { %1324 = vmatmul.mubr.msk.bf16.gmra.mxu0 %vm375_vm0, %v1506_v7 }
  0x36   : > { %1327 = vmatprep.mubr.msk.bf16.mxu0 %vm375_vm0, %v1507_v8  ;;  %1372 = vmatpush3.bf16.msra.mxu0 %v1521_v20  ;;  %v1528_v20 = vld [vmem:[#allocation2 + $0x30] sm:$0xff]  }
  0x37   : > { %1344 = vmatpush3.bf16.msra.mxu1 %v1515_v12  ;;  %1373 = vmatprep.subr.bf16.mxu0 %v1522_v21 }
  0x38   : > { %1345 = vmatprep.subr.bf16.mxu1 %v1516_v15 }
  0x3a   : > { %1374 = vmatpush3.bf16.msra.mxu0 %v1522_v21  ;;  %v1529_v21 = vld [vmem:[#allocation2 + $0x28] sm:$0xff]  }
  0x3b   : > { %1346 = vmatpush3.bf16.msra.mxu1 %v1516_v15  ;;  %1375 = vmatprep.subr.bf16.mxu0 %v1523_v22 }
  0x3c   : > { %1347 = vmatprep.subr.bf16.mxu1 %v1517_v16 }
  0x3d   : > { %1328 = vmatmul.mubr.msk.bf16.gmra.mxu0 %vm375_vm0, %v1508_v11 }
  0x3e   : > { %1331 = vmatprep.mubr.msk.bf16.mxu0 %vm375_vm0, %v1509_v13  ;;  %1376 = vmatpush3.bf16.msra.mxu0 %v1523_v22  ;;  %v1530_v22 = vld [vmem:[#allocation2 + $0x20] sm:$0xff]  }
  0x3f   : > { %1348 = vmatpush3.bf16.msra.mxu1 %v1517_v16  ;;  %v1524_v16 = vld [vmem:[%s1908_s3 + $0x50] sm:$0xff]  }
  0x40   : > { %1349 = vmatprep.subr.bf16.mxu1 %v1518_v17  ;;  %1377 = vmatprep.subr.bf16.mxu0 %v1524_v16 }
  0x42   : > { %1378 = vmatpush3.bf16.msra.mxu0 %v1524_v16 }
  0x43   : > { %1350 = vmatpush3.bf16.msra.mxu1 %v1518_v17  ;;  %v1525_v17 = vld [vmem:[%s1908_s3 + $0x48] sm:$0xff]  }
  0x44   : > { %1379 = vmatprep.subr.bf16.mxu0 %v1525_v17  ;;  %1431 = vmatprep.subr.bf16.mxu1 %v1527_v19 }
  0x45   : > { %1332 = vmatmul.mubr.msk.bf16.gmra.mxu0 %vm375_vm0, %v1510_v14 }
  0x46   : > { %1380 = vmatpush3.bf16.msra.mxu0 %v1525_v17  ;;  %v1532_v17 = vld [vmem:[#allocation2 + $0x10] sm:$0xff]  }
  0x47   : > { %1381 = vmatprep.subr.bf16.mxu0 %v1526_v18 }
  0x4a   : > { %1382 = vmatpush3.bf16.msra.mxu0 %v1526_v18  ;;  %v1533_v18 = vld [vmem:[#allocation2 + $0x8] sm:$0xff]  }
  0x4b   : > { %1399 = vmatprep.subr.bf16.mxu0 %v1527_v19 }
  0xed   : > { %v1321_v23 = vpop.f32.mrf.mxu0 }
  0xee   : > { %v443_v29 = vadd.f32 %v1321_v23, %v1188_v25  ;;  %v1818_v23 = vld [vmem:[#allocation2 + $0x18] sm:$0xff]  }
  0xef   : > { %v434_v24 = vpop.f32.mrf.mxu0 }
  0xf0   : > { %v435_v27 = vadd.f32 %v1188_v25, %v434_v24  ;;  %v499_v36 = vmax.f32 %v443_v29, 0.0 }
  0xf1   : > { %v1322_v26 = vpop.f32.mrf.mxu0 }
  0xf2   : > { %v446_v28 = vadd.f32 %v1322_v26, %v1188_v25  ;;  %v497_v34 = vmax.f32 %v435_v27, 0.0  ;;  %v1207_v26 = vld [vmem:[%s1909_s4] ss:$0 sm:$0xff] }
  0xf3   : > { %v437_v30 = vpop.f32.mrf.mxu0 }
  0xf4   : > { %v438_v31 = vadd.f32 %v1188_v25, %v437_v30  ;;  %v500_v32 = vmax.f32 %v446_v28, 0.0 }
  0xf5   : > { %v1325_v33 = vpop.f32.mrf.mxu0 }
  0xf6   : > { %v498_v35 = vmax.f32 %v438_v31, 0.0  ;;  %v514_v39 = vpack.c.bf16 %v500_v32, %v499_v36  ;;  %v459_v43 = vadd.f32 %v1325_v33, %v1188_v25 }
  0xf7   : > { %v450_v37 = vpop.f32.mrf.mxu0 }
  0xf8   : > { %v513_v38 = vpack.c.bf16 %v498_v35, %v497_v34  ;;  %v451_v41 = vadd.f32 %v1188_v25, %v450_v37  ;;  %v503_v50 = vmax.f32 %v459_v43, 0.0 }
  0xf9   : > { %v1326_v40 = vpop.f32.mrf.mxu0 }
  0xfa   : > { %v462_v42 = vadd.f32 %v1326_v40, %v1188_v25  ;;  %1351 = vmatprep.mubr.bf16.mxu1 %v513_v38  ;;  %v501_v48 = vmax.f32 %v451_v41, 0.0 }
  0xfb   : > { %v453_v44 = vpop.f32.mrf.mxu0  ;;  %1352 = vmatmul.mubr.bf16.vlgmr.msra.gmra.mxu1 %v514_v39 }
  0xfc   : > { %v454_v45 = vadd.f32 %v1188_v25, %v453_v44  ;;  %v504_v46 = vmax.f32 %v462_v42, 0.0  ;;  %1439 = vmatpush3.bf16.msra.mxu1 %v1527_v19 }
  0xfd   : > { %v1329_v47 = vpop.f32.mrf.mxu0  ;;  %1432 = vmatprep.subr.bf16.mxu1 %v1528_v20 }
  0xfe   : > { %v502_v49 = vmax.f32 %v454_v45, 0.0  ;;  %v516_v53 = vpack.c.bf16 %v504_v46, %v503_v50  ;;  %v475_v57 = vadd.f32 %v1329_v47, %v1188_v25 }
  0xff   : > { %v466_v51 = vpop.f32.mrf.mxu0 }
 0x100   : > { %v515_v52 = vpack.c.bf16 %v502_v49, %v501_v48  ;;  %v467_v55 = vadd.f32 %v1188_v25, %v466_v51  ;;  %v507_v0 = vmax.f32 %v475_v57, 0.0  ;;  %1440 = vmatpush3.bf16.msra.mxu1 %v1528_v20 }
 0x101   : > { %v1330_v54 = vpop.f32.mrf.mxu0  ;;  %1433 = vmatprep.subr.bf16.mxu1 %v1529_v21 }
 0x102   : > { %v478_v56 = vadd.f32 %v1330_v54, %v1188_v25  ;;  %1355 = vmatprep.mubr.bf16.mxu1 %v515_v52  ;;  %v505_v62 = vmax.f32 %v467_v55, 0.0 }
 0x103   : > { %v469_v58 = vpop.f32.mrf.mxu0  ;;  %1356 = vmatmul.mubr.bf16.gmra.mxu1 %v516_v53 }
 0x104   : > { %v470_v59 = vadd.f32 %v1188_v25, %v469_v58  ;;  %v508_v60 = vmax.f32 %v478_v56, 0.0  ;;  %1441 = vmatpush3.bf16.msra.mxu1 %v1529_v21 }
 0x105   : > { %v1333_v61 = vpop.f32.mrf.mxu0  ;;  %1434 = vmatprep.subr.bf16.mxu1 %v1530_v22 }
 0x106   : > { %v506_v63 = vmax.f32 %v470_v59, 0.0  ;;  %v518_v3 = vpack.c.bf16 %v508_v60, %v507_v0  ;;  %v491_v7 = vadd.f32 %v1333_v61, %v1188_v25 }
 0x107   : > { %v482_v1 = vpop.f32.mrf.mxu0 }
 0x108   : > { %v517_v2 = vpack.c.bf16 %v506_v63, %v505_v62  ;;  %v483_v5 = vadd.f32 %v1188_v25, %v482_v1  ;;  %v511_v13 = vmax.f32 %v491_v7, 0.0  ;;  %1442 = vmatpush3.bf16.msra.mxu1 %v1530_v22 }
 0x109   : > { %v1334_v4 = vpop.f32.mrf.mxu0  ;;  %1435 = vmatprep.subr.bf16.mxu1 %v1818_v23 }
 0x10a   : > { %v494_v6 = vadd.f32 %v1334_v4, %v1188_v25  ;;  %1359 = vmatprep.mubr.bf16.mxu1 %v517_v2  ;;  %v509_v11 = vmax.f32 %v483_v5, 0.0 }
 0x10b   : > { %v485_v8 = vpop.f32.mrf.mxu0  ;;  %1360 = vmatmul.mubr.bf16.gmra.mxu1 %v518_v3 }
 0x10c   : > { %v486_v9 = vadd.f32 %v1188_v25, %v485_v8  ;;  %v512_v10 = vmax.f32 %v494_v6, 0.0  ;;  %1443 = vmatpush3.bf16.msra.mxu1 %v1818_v23 }
 0x10d   : > { %1436 = vmatprep.subr.bf16.mxu1 %v1532_v17 }
 0x10e   : > { %v510_v12 = vmax.f32 %v486_v9, 0.0  ;;  %v520_v15 = vpack.c.bf16 %v512_v10, %v511_v13 }
 0x110   : > { %v519_v14 = vpack.c.bf16 %v510_v12, %v509_v11  ;;  %1444 = vmatpush3.bf16.msra.mxu1 %v1532_v17 }
 0x111   : > { %1437 = vmatprep.subr.bf16.mxu1 %v1533_v18 }
 0x112   : > { %1363 = vmatprep.mubr.bf16.mxu1 %v519_v14 }
 0x113   : > { %1364 = vmatmul.mubr.bf16.gmra.mxu1 %v520_v15 }
 0x114   : > { %1445 = vmatpush3.bf16.msra.mxu1 %v1533_v18 }
 0x1bb   : > { %v1353_v24 = vpop.f32.mrf.mxu1 }
 0x1bc   : > { %v635_v30 = vadd.f32 %v1353_v24, %v1207_v26 }
 0x1bd   : > { %v626_v25 = vpop.f32.mrf.mxu1 }
 0x1be   : > { %v627_v28 = vadd.f32 %v1207_v26, %v626_v25  ;;  %v691_v37 = vmax.f32 %v635_v30, 0.0 }
 0x1bf   : > { %v1354_v27 = vpop.f32.mrf.mxu1 }
 0x1c0   : > { %v638_v29 = vadd.f32 %v1354_v27, %v1207_v26  ;;  %v689_v35 = vmax.f32 %v627_v28, 0.0 }
 0x1c1   : > { %v629_v31 = vpop.f32.mrf.mxu1 }
 0x1c2   : > { %v630_v32 = vadd.f32 %v1207_v26, %v629_v31  ;;  %v692_v33 = vmax.f32 %v638_v29, 0.0 }
 0x1c3   : > { %v1357_v34 = vpop.f32.mrf.mxu1 }
 0x1c4   : > { %v690_v36 = vmax.f32 %v630_v32, 0.0  ;;  %v706_v40 = vpack.c.bf16 %v692_v33, %v691_v37  ;;  %v651_v44 = vadd.f32 %v1357_v34, %v1207_v26 }
 0x1c5   : > { %v642_v38 = vpop.f32.mrf.mxu1 }
 0x1c6   : > { %v705_v39 = vpack.c.bf16 %v690_v36, %v689_v35  ;;  %v643_v42 = vadd.f32 %v1207_v26, %v642_v38  ;;  %v695_v51 = vmax.f32 %v651_v44, 0.0 }
 0x1c7   : > { %v1358_v41 = vpop.f32.mrf.mxu1 }
 0x1c8   : > { %v654_v43 = vadd.f32 %v1358_v41, %v1207_v26  ;;  %1383 = vmatprep.mubr.bf16.mxu0 %v705_v39  ;;  %v693_v49 = vmax.f32 %v643_v42, 0.0 }
 0x1c9   : > { %v645_v45 = vpop.f32.mrf.mxu1  ;;  %1384 = vmatmul.mubr.bf16.vlgmr.msra.gmra.mxu0 %v706_v40 }
 0x1ca   : > { %v646_v46 = vadd.f32 %v1207_v26, %v645_v45  ;;  %1400 = vmatpush3.bf16.msra.mxu0 %v1527_v19  ;;  %v696_v47 = vmax.f32 %v654_v43, 0.0  ;;  %v1534_v19 = vld [vmem:[#allocation2] sm:$0xff]  }
 0x1cb   : > { %v1361_v48 = vpop.f32.mrf.mxu1  ;;  %1401 = vmatprep.subr.bf16.mxu0 %v1528_v20  ;;  %1438 = vmatprep.subr.bf16.mxu1 %v1534_v19 }
 0x1cc   : > { %v694_v50 = vmax.f32 %v646_v46, 0.0  ;;  %v708_v54 = vpack.c.bf16 %v696_v47, %v695_v51  ;;  %v667_v58 = vadd.f32 %v1361_v48, %v1207_v26  ;;  %1446 = vmatpush3.bf16.msra.mxu1 %v1534_v19 }
 0x1cd   : > { %v658_v52 = vpop.f32.mrf.mxu1 }
 0x1ce   : > { %v707_v53 = vpack.c.bf16 %v694_v50, %v693_v49  ;;  %1402 = vmatpush3.bf16.msra.mxu0 %v1528_v20  ;;  %v659_v56 = vadd.f32 %v1207_v26, %v658_v52  ;;  %v699_v1 = vmax.f32 %v667_v58, 0.0 }
 0x1cf   : > { %v1362_v55 = vpop.f32.mrf.mxu1  ;;  %1403 = vmatprep.subr.bf16.mxu0 %v1529_v21 }
 0x1d0   : > { %v670_v57 = vadd.f32 %v1362_v55, %v1207_v26  ;;  %1387 = vmatprep.mubr.bf16.mxu0 %v707_v53  ;;  %v697_v63 = vmax.f32 %v659_v56, 0.0 }
 0x1d1   : > { %v661_v59 = vpop.f32.mrf.mxu1  ;;  %1388 = vmatmul.mubr.bf16.gmra.mxu0 %v708_v54 }
 0x1d2   : > { %v662_v60 = vadd.f32 %v1207_v26, %v661_v59  ;;  %1404 = vmatpush3.bf16.msra.mxu0 %v1529_v21  ;;  %v700_v61 = vmax.f32 %v670_v57, 0.0 }
 0x1d3   : > { %v1365_v62 = vpop.f32.mrf.mxu1  ;;  %1405 = vmatprep.subr.bf16.mxu0 %v1530_v22 }
 0x1d4   : > { %v698_v0 = vmax.f32 %v662_v60, 0.0  ;;  %v710_v4 = vpack.c.bf16 %v700_v61, %v699_v1  ;;  %v683_v8 = vadd.f32 %v1365_v62, %v1207_v26 }
 0x1d5   : > { %v674_v2 = vpop.f32.mrf.mxu1 }
 0x1d6   : > { %v709_v3 = vpack.c.bf16 %v698_v0, %v697_v63  ;;  %1406 = vmatpush3.bf16.msra.mxu0 %v1530_v22  ;;  %v675_v6 = vadd.f32 %v1207_v26, %v674_v2  ;;  %v703_v14 = vmax.f32 %v683_v8, 0.0  ;;  %v1233_v22 = vld [vmem:[%s1909_s4 + $0x1] ss:$0 sm:$0xff] }
 0x1d7   : > { %v1366_v5 = vpop.f32.mrf.mxu1  ;;  %1407 = vmatprep.subr.bf16.mxu0 %v1818_v23 }
 0x1d8   : > { %v686_v7 = vadd.f32 %v1366_v5, %v1207_v26  ;;  %1391 = vmatprep.mubr.bf16.mxu0 %v709_v3  ;;  %v701_v12 = vmax.f32 %v675_v6, 0.0 }
 0x1d9   : > { %v677_v9 = vpop.f32.mrf.mxu1  ;;  %1392 = vmatmul.mubr.bf16.gmra.mxu0 %v710_v4 }
 0x1da   : > { %v678_v10 = vadd.f32 %v1207_v26, %v677_v9  ;;  %1408 = vmatpush3.bf16.msra.mxu0 %v1818_v23  ;;  %v704_v11 = vmax.f32 %v686_v7, 0.0 }
 0x1db   : > { %1409 = vmatprep.subr.bf16.mxu0 %v1532_v17 }
 0x1dc   : > { %v702_v13 = vmax.f32 %v678_v10, 0.0  ;;  %v712_v16 = vpack.c.bf16 %v704_v11, %v703_v14 }
 0x1de   : > { %v711_v15 = vpack.c.bf16 %v702_v13, %v701_v12  ;;  %1410 = vmatpush3.bf16.msra.mxu0 %v1532_v17  ;;  %v1242_v13 = vld [vmem:[%s1911_s6] ss:$0 sm:$0xff] }
 0x1df   : > { %1411 = vmatprep.subr.bf16.mxu0 %v1533_v18 }
 0x1e0   : > { %1395 = vmatprep.mubr.bf16.mxu0 %v711_v15 }
 0x1e1   : > { %1396 = vmatmul.mubr.bf16.gmra.mxu0 %v712_v16 }
 0x1e2   : > { %1412 = vmatpush3.bf16.msra.mxu0 %v1533_v18 }
 0x1e3   : > { %1413 = vmatprep.subr.bf16.mxu0 %v1534_v19 }
 0x1e6   : > { %1414 = vmatpush3.bf16.msra.mxu0 %v1534_v19 }
 0x289   : > { %v1385_v20 = vpop.f32.mrf.mxu0 }
 0x28a   : > { %v829_v26 = vadd.f32 %v1385_v20, %v1233_v22 }
 0x28b   : > { %v820_v21 = vpop.f32.mrf.mxu0 }
 0x28c   : > { %v821_v24 = vadd.f32 %v1233_v22, %v820_v21  ;;  %v885_v33 = vmax.f32 %v829_v26, 0.0 }
 0x28d   : > { %v1386_v23 = vpop.f32.mrf.mxu0 }
 0x28e   : > { %v832_v25 = vadd.f32 %v1386_v23, %v1233_v22  ;;  %v883_v31 = vmax.f32 %v821_v24, 0.0 }
 0x28f   : > { %v823_v27 = vpop.f32.mrf.mxu0 }
 0x290   : > { %v824_v28 = vadd.f32 %v1233_v22, %v823_v27  ;;  %v886_v29 = vmax.f32 %v832_v25, 0.0 }
 0x291   : > { %v1389_v30 = vpop.f32.mrf.mxu0 }
 0x292   : > { %v884_v32 = vmax.f32 %v824_v28, 0.0  ;;  %v900_v36 = vpack.c.bf16 %v886_v29, %v885_v33  ;;  %v845_v40 = vadd.f32 %v1389_v30, %v1233_v22 }
 0x293   : > { %v836_v34 = vpop.f32.mrf.mxu0 }
 0x294   : > { %v899_v35 = vpack.c.bf16 %v884_v32, %v883_v31  ;;  %v837_v38 = vadd.f32 %v1233_v22, %v836_v34  ;;  %v889_v47 = vmax.f32 %v845_v40, 0.0 }
 0x295   : > { %v1390_v37 = vpop.f32.mrf.mxu0 }
 0x296   : > { %v848_v39 = vadd.f32 %v1390_v37, %v1233_v22  ;;  %1415 = vmatprep.mubr.bf16.mxu0 %v899_v35  ;;  %v887_v45 = vmax.f32 %v837_v38, 0.0 }
 0x297   : > { %v839_v41 = vpop.f32.mrf.mxu0  ;;  %1416 = vmatmul.mubr.bf16.vlgmr.msra.gmra.mxu0 %v900_v36 }
 0x298   : > { %v840_v42 = vadd.f32 %v1233_v22, %v839_v41  ;;  %v890_v43 = vmax.f32 %v848_v39, 0.0 }
 0x299   : > { %v1393_v44 = vpop.f32.mrf.mxu0 }
 0x29a   : > { %v888_v46 = vmax.f32 %v840_v42, 0.0  ;;  %v902_v50 = vpack.c.bf16 %v890_v43, %v889_v47  ;;  %v861_v54 = vadd.f32 %v1393_v44, %v1233_v22 }
 0x29b   : > { %v852_v48 = vpop.f32.mrf.mxu0 }
 0x29c   : > { %v901_v49 = vpack.c.bf16 %v888_v46, %v887_v45  ;;  %v853_v52 = vadd.f32 %v1233_v22, %v852_v48  ;;  %v893_v61 = vmax.f32 %v861_v54, 0.0 }
 0x29d   : > { %v1394_v51 = vpop.f32.mrf.mxu0 }
 0x29e   : > { %v864_v53 = vadd.f32 %v1394_v51, %v1233_v22  ;;  %1419 = vmatprep.mubr.bf16.mxu1 %v901_v49  ;;  %v891_v59 = vmax.f32 %v853_v52, 0.0 }
 0x29f   : > { %v855_v55 = vpop.f32.mrf.mxu0  ;;  %1420 = vmatmul.mubr.bf16.vlgmr.msra.gmra.mxu1 %v902_v50 }
 0x2a0   : > { %v856_v56 = vadd.f32 %v1233_v22, %v855_v55  ;;  %v894_v57 = vmax.f32 %v864_v53, 0.0 }
 0x2a1   : > { %v1397_v58 = vpop.f32.mrf.mxu0 }
 0x2a2   : > { %v892_v60 = vmax.f32 %v856_v56, 0.0  ;;  %v904_v0 = vpack.c.bf16 %v894_v57, %v893_v61  ;;  %v877_v4 = vadd.f32 %v1397_v58, %v1233_v22 }
 0x2a3   : > { %v868_v62 = vpop.f32.mrf.mxu0 }
 0x2a4   : > { %v903_v63 = vpack.c.bf16 %v892_v60, %v891_v59  ;;  %v869_v2 = vadd.f32 %v1233_v22, %v868_v62  ;;  %v897_v10 = vmax.f32 %v877_v4, 0.0 }
 0x2a5   : > { %v1398_v1 = vpop.f32.mrf.mxu0 }
 0x2a6   : > { %v880_v3 = vadd.f32 %v1398_v1, %v1233_v22  ;;  %1423 = vmatprep.mubr.bf16.mxu1 %v903_v63  ;;  %v895_v8 = vmax.f32 %v869_v2, 0.0 }
 0x2a7   : > { %v871_v5 = vpop.f32.mrf.mxu0  ;;  %1424 = vmatmul.mubr.bf16.gmra.mxu1 %v904_v0 }
 0x2a8   : > { %v872_v6 = vadd.f32 %v1233_v22, %v871_v5  ;;  %v898_v7 = vmax.f32 %v880_v3, 0.0 }
 0x2aa   : > { %v896_v9 = vmax.f32 %v872_v6, 0.0  ;;  %v906_v12 = vpack.c.bf16 %v898_v7, %v897_v10 }
 0x2ac   : > { %v905_v11 = vpack.c.bf16 %v896_v9, %v895_v8 }
 0x2ae   : > { %1427 = vmatprep.mubr.bf16.mxu1 %v905_v11 }
 0x2af   : > { %1428 = vmatmul.mubr.bf16.gmra.mxu1 %v906_v12 }
 0x357   : > { %v1417_v14 = vpop.f32.mrf.mxu0 }
 0x358   : > { %v1021_v15 = vadd.f32 %v1417_v14, %v1242_v13 }
 0x359   : > { %v1012_v16 = vpop.f32.mrf.mxu0 }
 0x35a   : > { %1077 = vst [vmem:[%s1836_s17 + $0x10] sm:$0xff] %v1021_v15  ;;  %v1013_v17 = vadd.f32 %v1242_v13, %v1012_v16 }
 0x35b   : > { %v1418_v18 = vpop.f32.mrf.mxu0 }
 0x35c   : > { %1075 = vst [vmem:[%s1836_s17] sm:$0xff] %v1013_v17  ;;  %v1024_v19 = vadd.f32 %v1418_v18, %v1242_v13 }
 0x35d   : > { %v1015_v20 = vpop.f32.mrf.mxu0 }
 0x35e   : > { %1078 = vst [vmem:[%s1836_s17 + $0x18] sm:$0xff] %v1024_v19  ;;  %v1016_v21 = vadd.f32 %v1242_v13, %v1015_v20 }
 0x35f   : > { %v1421_v22 = vpop.f32.mrf.mxu1 }
 0x360   : > { %1076 = vst [vmem:[%s1836_s17 + $0x8] sm:$0xff] %v1016_v21  ;;  %v1037_v23 = vadd.f32 %v1421_v22, %v1242_v13 }
 0x361   : > { %v1028_v24 = vpop.f32.mrf.mxu1 }
 0x362   : > { %1081 = vst [vmem:[%s1836_s17 + $0x30] sm:$0xff] %v1037_v23  ;;  %v1029_v25 = vadd.f32 %v1242_v13, %v1028_v24 }
 0x363   : > { %v1422_v26 = vpop.f32.mrf.mxu1 }
 0x364   : > { %1079 = vst [vmem:[%s1836_s17 + $0x20] sm:$0xff] %v1029_v25  ;;  %v1040_v27 = vadd.f32 %v1422_v26, %v1242_v13 }
 0x365   : > { %v1031_v28 = vpop.f32.mrf.mxu1 }
 0x366   : > { %1082 = vst [vmem:[%s1836_s17 + $0x38] sm:$0xff] %v1040_v27  ;;  %v1032_v29 = vadd.f32 %v1242_v13, %v1031_v28 }
 0x367   : > { %v1425_v30 = vpop.f32.mrf.mxu1 }
 0x368   : > { %1080 = vst [vmem:[%s1836_s17 + $0x28] sm:$0xff] %v1032_v29  ;;  %v1053_v31 = vadd.f32 %v1425_v30, %v1242_v13 }
 0x369   : > { %v1044_v32 = vpop.f32.mrf.mxu1 }
 0x36a   : > { %1085 = vst [vmem:[%s1836_s17 + $0x50] sm:$0xff] %v1053_v31  ;;  %v1045_v33 = vadd.f32 %v1242_v13, %v1044_v32 }
 0x36b   : > { %v1426_v34 = vpop.f32.mrf.mxu1 }
 0x36c   : > { %1083 = vst [vmem:[%s1836_s17 + $0x40] sm:$0xff] %v1045_v33  ;;  %v1056_v35 = vadd.f32 %v1426_v34, %v1242_v13 }
 0x36d   : > { %v1047_v36 = vpop.f32.mrf.mxu1 }
 0x36e   : > { %1086 = vst [vmem:[%s1836_s17 + $0x58] sm:$0xff] %v1056_v35  ;;  %v1048_v37 = vadd.f32 %v1242_v13, %v1047_v36 }
 0x36f   : > { %v1429_v38 = vpop.f32.mrf.mxu1 }
 0x370   : > { %1084 = vst [vmem:[%s1836_s17 + $0x48] sm:$0xff] %v1048_v37  ;;  %v1069_v39 = vadd.f32 %v1429_v38, %v1242_v13 }
 0x371   : > { %v1060_v40 = vpop.f32.mrf.mxu1 }
 0x372   : > { %1089 = vst [vmem:[%s1836_s17 + $0x70] sm:$0xff] %v1069_v39  ;;  %v1061_v41 = vadd.f32 %v1242_v13, %v1060_v40 }
 0x373   : > { %v1430_v42 = vpop.f32.mrf.mxu1 }
 0x374   : > { %1087 = vst [vmem:[%s1836_s17 + $0x60] sm:$0xff] %v1061_v41  ;;  %v1072_v43 = vadd.f32 %v1430_v42, %v1242_v13 }
 0x375   : > { %v1063_v44 = vpop.f32.mrf.mxu1 }
 0x376   : > { %1090 = vst [vmem:[%s1836_s17 + $0x78] sm:$0xff] %v1072_v43  ;;  %v1064_v45 = vadd.f32 %v1242_v13, %v1063_v44 }
 0x378   : > { %1088 = vst [vmem:[%s1836_s17 + $0x68] sm:$0xff] %v1064_v45 }
 0x379   : > { %1574 = shalt.err (!%p1571_p0)
}
 0x37a   : > { %s1575_s14 = scalar_lea.hbm %s1857_s21, 2048  ;;  %s1579_s16 = scalar_lea.hbm %s1912_s7, 4096 }
 0x37b   : > { %p1576_p1 = scmp.ne.s32.totalorder %s1857_s21, %s1575_s14  ;;  %p1580_p4 = scmp.lt.s32.totalorder %s1857_s21, %s1912_s7 }
 0x37c   : > { %p1581_p7 = scmp.lt.s32.totalorder %s1579_s16, %s1575_s14 }
 0x37d   : > { %p1577_p2 = pnand %p1576_p1, %p1711_p5 }
 0x37e   : > { %p1582_p8 = por %p1581_p7, %p1580_p4 }
 0x37f   : > { %p1578_p3 = pneg %p1577_p2 }
 0x381   : > { %p1583_p6 = pnand %p1582_p8, %p1578_p3 }
 0x383   : > { %1586 = shalt.err (!%p1583_p6)
}
 0x384   : > { %s1631_s19 = smov 128   ;;  %s1632_s20 = smov 8  }
 0x385   : > { %1451 = dma.vmem_to_hbm [thread:$0]  (%p1711_p5), %s1859_s8, 2048, %s1857_s21, %s1865_s28, %s1631_s19, %s1631_s19, %s1632_s20  }
 0x386 PF: > { %p1463_p9 = scmp.ge.s32.totalorder %s1625_s27, 2  ;;  %s1120_s22 = sand.u32 1, %s1613_s24  }
 0x387   : > { %p1916_p10 = scmp.ne.s32.totalorder %s1914_s12, 0  ;;  %s1121_s23 = scalar_lea.sflag [#allocation4], %s1120_s22 }
 0x389   : > { %p1458_p11 = pnand %p1463_p9, %p1916_p10 }
 0x38b   : > { %p1459_p12 = pneg %p1458_p11 }
 0x38d   : > { %1608 = dma.done.wait (%p1459_p12), %s1121_s23, 2048  }
 0x38e   : > { %1610 = vsyncadd (%p1459_p12), %s1121_s23, 4294965248  ;;  %p18_p13 = scmp.ge.s32.totalorder %s1698_s30, 4   ;;  %s1917_s24 = smov %s1617_s25 }
 0x38f   : > { %s1918_s25 = smov %s1621_s26  ;;  %s1919_s26 = smov %s1709_s10 }
 0x390   : > { %s1920_s27 = smov %s1698_s30  ;;  %20 = sbr.rel (!%p18_p13) target bundleno = 4 (0x4), region = 90 }
 0x395   :  { %1126 = vsyncpa [#allocation3], 1 }
 0x396   :  { %1128 = vsyncpa [#allocation3 + $0x1], 1 }
 0x397   :  { %1129 = vsyncpa [#allocation4], 1 }
 0x398   :  { %1131 = vsyncpa [#allocation4 + $0x1], 1 }

</bundles_post_ra>
